<compile_context>
chip_gen: v7x
topology: tpu7x:2x2x1
jax: 0.10.0
libtpu: 0.0.40
codegen_flags: <defaults>
</compile_context>

<pallas_src>
import jax
import jax.numpy as jnp
from jax.experimental import pallas as pl
from jax.experimental.pallas import tpu as pltpu


# ----------------------------- Pallas kernels ------------------------------

def _prep_kernel(x_ref, w_ref, w2_ref, w3_ref, a_ref, b_ref):
    """Per-node work: encode + relu + W2 + D->1 projections, emitted as the
    augmented pair-matmul operands A = [z*w3b | p | 1], B = [z | 1 | q]."""
    D = w_ref.shape[1]

    z = jnp.dot(x_ref[...], w_ref[...],
                preferred_element_type=jnp.float32)            # [T, D]   MXU
    zr = jnp.maximum(z, 0.0)                                   # relu(z)  VPU

    # static ref slices of the stacked W2 (stays pinned in VMEM across the grid)
    u = jnp.dot(zr, w2_ref[:D, :], preferred_element_type=jnp.float32)   # [T, D]
    v = jnp.dot(zr, w2_ref[D:, :], preferred_element_type=jnp.float32)   # [T, D]

    w3a = w3_ref[:, :D]                                        # [1, D]
    w3b = w3_ref[:, D:]                                        # [1, D]

    # D -> 1 projections on VPU mul + XLU lane-reduce (no 1-column MXU matmul)
    p = jnp.sum(u * w3a, axis=-1, keepdims=True)               # [T, 1]
    q = jnp.sum(v * w3a, axis=-1, keepdims=True)               # [T, 1]
    ones = jnp.ones_like(p)

    # A_i . B_j = (z_i*w3b).z_j + p_i + q_j  == logit_ij
    a_ref[:, :D] = z * w3b
    a_ref[:, D:D + 1] = p
    a_ref[:, D + 1:D + 2] = ones

    b_ref[:, :D] = z
    b_ref[:, D:D + 1] = ones
    b_ref[:, D + 1:D + 2] = q


def _pair_kernel(a_ref, b_ref, o_ref):
    """One (TI, TJ) tile of the N x N output: a single rhs-transposed MXU matmul
    followed by the module's double sigmoid. Output tile is lane-dense."""
    logits = jax.lax.dot_general(
        a_ref[...], b_ref[...],
        dimension_numbers=(((1,), (1,)), ((), ())),            # contract feature dim
        preferred_element_type=jnp.float32)                    # [TI, TJ]
    o_ref[...] = jax.nn.sigmoid(jax.nn.sigmoid(logits))        # sigmoid(decode) per forward()


# ----------------------------- wrapper --------------------------------------

def _round_up(n, m):
    return (n + m - 1) // m * m


def neumf_feature_forward(x, weight, weight_two, weight_three, *, tile=512):
    """Forward pass of NEUMF_feature_Layer: [N, N] = sigmoid(sigmoid(pair logits))."""
    N, input_dim = x.shape
    D = weight.shape[1]
    DA = D + 2

    # lane-dense square tile (multiple of 128); pad the node axis so every tile is full
    t = min(tile, _round_up(N, 128))
    n_pad = _round_up(N, t)
    if n_pad != N:
        x = jnp.pad(x, ((0, n_pad - N), (0, 0)))               # zero rows -> zero logits, sliced off

    w3_row = weight_three.reshape(1, 2 * D)                    # (2D,1) -> (1,2D) parameter glue

    # ---- kernel 1: per-node prep (tiled over rows, weights pinned in VMEM) ----
    prep_cost = pl.CostEstimate(
        flops=2 * n_pad * input_dim * D + 4 * n_pad * D * D + 8 * n_pad * D,
        transcendentals=0,
        bytes_accessed=4 * (n_pad * input_dim + input_dim * D + 2 * D * D + 2 * D
                            + 2 * n_pad * DA))
    a_mat, b_mat = pl.pallas_call(
        _prep_kernel,
        out_shape=(jax.ShapeDtypeStruct((n_pad, DA), jnp.float32),
                   jax.ShapeDtypeStruct((n_pad, DA), jnp.float32)),
        grid=(n_pad // t,),
        in_specs=[
            pl.BlockSpec((t, input_dim), lambda r: (r, 0)),
            pl.BlockSpec(weight.shape, lambda r: (0, 0)),        # constant map -> pinned
            pl.BlockSpec(weight_two.shape, lambda r: (0, 0)),    # constant map -> pinned
            pl.BlockSpec(w3_row.shape, lambda r: (0, 0)),        # constant map -> pinned
        ],
        out_specs=(pl.BlockSpec((t, DA), lambda r: (r, 0)),
                   pl.BlockSpec((t, DA), lambda r: (r, 0))),
        compiler_params=pltpu.CompilerParams(
            dimension_semantics=("parallel",)),
        cost_estimate=prep_cost,
    )(x, weight, weight_two, w3_row)

    # ---- kernel 2: all-pairs decode, (i, j) grid, both axes parallel ----
    g = n_pad // t
    pair_cost = pl.CostEstimate(
        flops=2 * n_pad * n_pad * DA + 2 * n_pad * n_pad,
        transcendentals=2 * n_pad * n_pad,
        bytes_accessed=4 * (2 * g * n_pad * DA + n_pad * n_pad))
    out = pl.pallas_call(
        _pair_kernel,
        out_shape=jax.ShapeDtypeStruct((n_pad, n_pad), jnp.float32),
        grid=(g, g),
        in_specs=[
            pl.BlockSpec((t, DA), lambda i, j: (i, 0)),
            pl.BlockSpec((t, DA), lambda i, j: (j, 0)),
        ],
        out_specs=pl.BlockSpec((t, t), lambda i, j: (i, j)),
        compiler_params=pltpu.CompilerParams(
            dimension_semantics=("parallel", "parallel")),
        cost_estimate=pair_cost,
    )(a_mat, b_mat)

    return out[:N, :N]


# ----------------------------- parameter init --------------------------------

def xavier_uniform(key, fan_in, fan_out):
    bound = jnp.sqrt(6.0 / (fan_in + fan_out))
    return jax.random.uniform(key, (fan_in, fan_out), jnp.float32, -bound, bound)


def kaiming_uniform_sigmoid(key, rows, cols):
    # nn.init.kaiming_uniform_(t, a=1, nonlinearity='sigmoid'):
    # gain = 1, fan_in = t.size(1) = cols, bound = sqrt(3 / fan_in)
    bound = jnp.sqrt(3.0 / cols)
    return jax.random.uniform(key, (rows, cols), jnp.float32, -bound, bound)


# ----------------------------- main ------------------------------------------

if __name__ == "__main__":
    key = jax.random.PRNGKey(0)
    k_x, k_w, k_w2, k_w3 = jax.random.split(key, 4)

    N = 32            # node_size
    input_dim = 16
    output_dim = 32

    x = jax.random.normal(k_x, (N, input_dim), jnp.float32)
    weight = xavier_uniform(k_w, input_dim, output_dim)
    weight_two = xavier_uniform(k_w2, output_dim * 2, output_dim)
    weight_three = kaiming_uniform_sigmoid(k_w3, output_dim * 2, 1)

    out = neumf_feature_forward(x, weight, weight_two, weight_three)
    out = jax.block_until_ready(out)

    # reference: literal translation of the PyTorch forward (all-pairs decode)
    z = x @ weight
    z1 = jnp.repeat(z, N, axis=0)                 # z.repeat(1, N).reshape(-1, D)
    z2 = jnp.tile(z, (N, 1))                      # z.repeat(N, 1).reshape(-1, D)
    z_pair = jnp.maximum(jnp.concatenate([z1, z2], axis=1), 0.0)
    z_mult = z1 * z2
    h = z_pair @ weight_two
    logits = (jnp.concatenate([h, z_mult], axis=1) @ weight_three).reshape(N, N)
    ref = jax.nn.sigmoid(jax.nn.sigmoid(logits))  # decode's sigmoid + forward's sigmoid

    assert out.shape == (N, N), out.shape
    max_err = float(jnp.max(jnp.abs(out - ref)))
    assert jnp.allclose(out, ref, atol=1e-4, rtol=1e-4), max_err

    print("KERNEL_OK")
</pallas_src>

<mosaic_0001>
module attributes {stable_mosaic.version = 11 : i64} {
  func.func @_prep_kernel(%arg0: i32, %arg1: memref<128x16xf32, #tpu.memory_space<vmem>>, %arg2: memref<16x32xf32, #tpu.memory_space<vmem>>, %arg3: memref<64x32xf32, #tpu.memory_space<vmem>>, %arg4: memref<1x64xf32, #tpu.memory_space<vmem>>, %arg5: memref<128x34xf32, #tpu.memory_space<vmem>>, %arg6: memref<128x34xf32, #tpu.memory_space<vmem>>) attributes {dimension_semantics = [#tpu.dimension_semantics<parallel>], iteration_bounds = array<i64: 1>, scalar_prefetch = 0 : i64, scratch_operands = 0 : i64, tpu.core_type = #tpu.core_type<tc>, window_params = [{transform_indices = @transform_0, window_bounds = array<i64: 128, 16>}, {pipeline_mode = #tpu.pipeline_mode<synchronous>, transform_indices = @transform_1, window_bounds = array<i64: 16, 32>}, {pipeline_mode = #tpu.pipeline_mode<synchronous>, transform_indices = @transform_2, window_bounds = array<i64: 64, 32>}, {pipeline_mode = #tpu.pipeline_mode<synchronous>, transform_indices = @transform_3, window_bounds = array<i64: 1, 64>}, {transform_indices = @transform_4, window_bounds = array<i64: 128, 34>}, {transform_indices = @transform_5, window_bounds = array<i64: 128, 34>}]} {
    %c0 = arith.constant 0 : index
    %c0_0 = arith.constant 0 : index
    %0 = vector.load %arg1[%c0, %c0_0] : memref<128x16xf32, #tpu.memory_space<vmem>>, vector<128x16xf32>
    %c0_1 = arith.constant 0 : index
    %c0_2 = arith.constant 0 : index
    %1 = vector.load %arg2[%c0_1, %c0_2] : memref<16x32xf32, #tpu.memory_space<vmem>>, vector<16x32xf32>
    %cst = arith.constant dense<0.000000e+00> : vector<128x32xf32>
    %2 = tpu.matmul %0, %1, %cst {dimension_numbers = #tpu.dot_dimension_numbers<[1], [0], [0], [1], [0, 0, 1, 1], [], []>} : vector<128x16xf32>, vector<16x32xf32>, vector<128x32xf32> -> vector<128x32xf32>
    %cst_3 = arith.constant 0.000000e+00 : f32
    %3 = vector.broadcast %cst_3 : f32 to vector<128x32xf32>
    %4 = arith.maximumf %2, %3 : vector<128x32xf32>
    %c0_4 = arith.constant 0 : index
    %c0_5 = arith.constant 0 : index
    %5 = vector.load %arg3[%c0_4, %c0_5] : memref<64x32xf32, #tpu.memory_space<vmem>>, vector<32x32xf32>
    %cst_6 = arith.constant dense<0.000000e+00> : vector<128x32xf32>
    %6 = tpu.matmul %4, %5, %cst_6 {dimension_numbers = #tpu.dot_dimension_numbers<[1], [0], [0], [1], [0, 0, 1, 1], [], []>} : vector<128x32xf32>, vector<32x32xf32>, vector<128x32xf32> -> vector<128x32xf32>
    %c32 = arith.constant 32 : index
    %c0_7 = arith.constant 0 : index
    %7 = vector.load %arg3[%c32, %c0_7] : memref<64x32xf32, #tpu.memory_space<vmem>>, vector<32x32xf32>
    %cst_8 = arith.constant dense<0.000000e+00> : vector<128x32xf32>
    %8 = tpu.matmul %4, %7, %cst_8 {dimension_numbers = #tpu.dot_dimension_numbers<[1], [0], [0], [1], [0, 0, 1, 1], [], []>} : vector<128x32xf32>, vector<32x32xf32>, vector<128x32xf32> -> vector<128x32xf32>
    %c0_9 = arith.constant 0 : index
    %c0_10 = arith.constant 0 : index
    %9 = vector.load %arg4[%c0_9, %c0_10] : memref<1x64xf32, #tpu.memory_space<vmem>>, vector<1x32xf32>
    %c0_11 = arith.constant 0 : index
    %c32_12 = arith.constant 32 : index
    %10 = vector.load %arg4[%c0_11, %c32_12] : memref<1x64xf32, #tpu.memory_space<vmem>>, vector<1x32xf32>
    %11 = vector.broadcast %9 : vector<1x32xf32> to vector<128x32xf32>
    %12 = arith.mulf %6, %11 : vector<128x32xf32>
    %cst_13 = arith.constant dense<0.000000e+00> : vector<128xf32>
    %13 = vector.multi_reduction <add>, %12, %cst_13 [1] : vector<128x32xf32> to vector<128xf32>
    %14 = vector.shape_cast %13 : vector<128xf32> to vector<128x1xf32>
    %15 = vector.broadcast %9 : vector<1x32xf32> to vector<128x32xf32>
    %16 = arith.mulf %8, %15 : vector<128x32xf32>
    %cst_14 = arith.constant dense<0.000000e+00> : vector<128xf32>
    %17 = vector.multi_reduction <add>, %16, %cst_14 [1] : vector<128x32xf32> to vector<128xf32>
    %18 = vector.shape_cast %17 : vector<128xf32> to vector<128x1xf32>
    %cst_15 = arith.constant 1.000000e+00 : f32
    %19 = vector.broadcast %cst_15 : f32 to vector<128x1xf32>
    %20 = vector.broadcast %10 : vector<1x32xf32> to vector<128x32xf32>
    %21 = arith.mulf %2, %20 : vector<128x32xf32>
    %c0_16 = arith.constant 0 : index
    %c0_17 = arith.constant 0 : index
    %22 = vector.load %arg5[%c0_16, %c0_17] : memref<128x34xf32, #tpu.memory_space<vmem>>, vector<128x32xf32>
    tpu.vector_store %arg5[%c0_16, %c0_17], %21 {strides = array<i32>} : memref<128x34xf32, #tpu.memory_space<vmem>>, vector<128x32xf32>,
    %c0_18 = arith.constant 0 : index
    %c32_19 = arith.constant 32 : index
    %23 = vector.load %arg5[%c0_18, %c32_19] : memref<128x34xf32, #tpu.memory_space<vmem>>, vector<128x1xf32>
    tpu.vector_store %arg5[%c0_18, %c32_19], %14 {strides = array<i32>} : memref<128x34xf32, #tpu.memory_space<vmem>>, vector<128x1xf32>,
    %c0_20 = arith.constant 0 : index
    %c33 = arith.constant 33 : index
    %24 = vector.load %arg5[%c0_20, %c33] : memref<128x34xf32, #tpu.memory_space<vmem>>, vector<128x1xf32>
    tpu.vector_store %arg5[%c0_20, %c33], %19 {strides = array<i32>} : memref<128x34xf32, #tpu.memory_space<vmem>>, vector<128x1xf32>,
    %c0_21 = arith.constant 0 : index
    %c0_22 = arith.constant 0 : index
    %25 = vector.load %arg6[%c0_21, %c0_22] : memref<128x34xf32, #tpu.memory_space<vmem>>, vector<128x32xf32>
    tpu.vector_store %arg6[%c0_21, %c0_22], %2 {strides = array<i32>} : memref<128x34xf32, #tpu.memory_space<vmem>>, vector<128x32xf32>,
    %c0_23 = arith.constant 0 : index
    %c32_24 = arith.constant 32 : index
    %26 = vector.load %arg6[%c0_23, %c32_24] : memref<128x34xf32, #tpu.memory_space<vmem>>, vector<128x1xf32>
    tpu.vector_store %arg6[%c0_23, %c32_24], %19 {strides = array<i32>} : memref<128x34xf32, #tpu.memory_space<vmem>>, vector<128x1xf32>,
    %c0_25 = arith.constant 0 : index
    %c33_26 = arith.constant 33 : index
    %27 = vector.load %arg6[%c0_25, %c33_26] : memref<128x34xf32, #tpu.memory_space<vmem>>, vector<128x1xf32>
    tpu.vector_store %arg6[%c0_25, %c33_26], %18 {strides = array<i32>} : memref<128x34xf32, #tpu.memory_space<vmem>>, vector<128x1xf32>,
    return
  }
  func.func @transform_0(%arg0: i32) -> (i32, i32) {
    %c0_i32 = arith.constant 0 : i32
    %c0_i32_0 = arith.constant 0 : i32
    return %arg0, %c0_i32 : i32, i32
  }
  func.func @transform_1(%arg0: i32) -> (i32, i32) {
    %c0_i32 = arith.constant 0 : i32
    %c0_i32_0 = arith.constant 0 : i32
    %c0_i32_1 = arith.constant 0 : i32
    return %c0_i32, %c0_i32_0 : i32, i32
  }
  func.func @transform_2(%arg0: i32) -> (i32, i32) {
    %c0_i32 = arith.constant 0 : i32
    %c0_i32_0 = arith.constant 0 : i32
    %c0_i32_1 = arith.constant 0 : i32
    return %c0_i32, %c0_i32_0 : i32, i32
  }
  func.func @transform_3(%arg0: i32) -> (i32, i32) {
    %c0_i32 = arith.constant 0 : i32
    %c0_i32_0 = arith.constant 0 : i32
    %c0_i32_1 = arith.constant 0 : i32
    return %c0_i32, %c0_i32_0 : i32, i32
  }
  func.func @transform_4(%arg0: i32) -> (i32, i32) {
    %c0_i32 = arith.constant 0 : i32
    %c0_i32_0 = arith.constant 0 : i32
    return %arg0, %c0_i32 : i32, i32
  }
  func.func @transform_5(%arg0: i32) -> (i32, i32) {
    %c0_i32 = arith.constant 0 : i32
    %c0_i32_0 = arith.constant 0 : i32
    return %arg0, %c0_i32 : i32, i32
  }
}

</mosaic_0001>

<bundles_post_ra>
// kernel: tpu_custom_call.1
= control target key start
LH: loop header
LB: loop body
LE: loop exit
PB: predicated region body
PF: predicated region fallthrough
CT: control target
= control target key end

     0   :  { %vm37_vm0 = vcmask 130048   ;;  %vm251_vm1 = vcmask 261120   ;;  %vm764_vm2 = vcmask 269568   ;;  %s1078_s24 = smov 96   ;;  %vm781_vm3 = vcmask 277768   ;;  %s1846_s1 = inlined_call_operand.vmem [shape: f32[16,32], index: 1, kind: input, shape index: {}]   ;;  %s1847_s0 = inlined_call_operand.vmem [shape: f32[128,16], index: 0, kind: input, shape index: {}]   ;;  %s1848_s2 = inlined_call_operand.vmem [shape: f32[64,32], index: 2, kind: input, shape index: {}]   ;;  %s1849_s5 = inlined_call_operand.vmem [shape: f32[128,34], index: 5, kind: output, shape index: {1}]   ;;  %s1850_s3 = inlined_call_operand.vmem [shape: f32[1,64], index: 3, kind: input, shape index: {}]   ;;  %s1851_s4 = inlined_call_operand.vmem [shape: f32[128,34], index: 4, kind: output, shape index: {0}]  }
   0x1   :  { %v35_v0 = vld [vmem:[%s1846_s1] sm:$0xff]  ;;  %v36_v1 = vld [vmem:[%s1846_s1 + $0x8] sm:$0xff]  ;;  %v21_v7 = vld [vmem:[%s1847_s0 + $0x10] sm:$0xff] }
   0x2   :  { %v19_v2 = vld [vmem:[%s1847_s0] sm:$0xff]  ;;  %v1053_v3 = vpack.c.bf16 %v36_v1, %v35_v0  ;;  %v20_v5 = vld [vmem:[%s1847_s0 + $0x8] sm:$0xff]  ;;  %v29_v8 = vld [vmem:[%s1847_s0 + $0x50] sm:$0xff] }
   0x3   :  { %965 = vmatprep.mubr.msk.f32.mxu0 %vm37_vm0, %v19_v2  ;;  %v27_v4 = vld [vmem:[%s1847_s0 + $0x40] sm:$0xff]  ;;  %v28_v6 = vld [vmem:[%s1847_s0 + $0x48] sm:$0xff]  ;;  %v249_v14 = vld [vmem:[%s1848_s2 + $0x10] sm:$0xff] }
   0x4   :  { %1054 = vmatprep.subr.bf16.mxu0 %v1053_v3  ;;  %1073 = vmatprep.subr.bf16.mxu1 %v1053_v3  ;;  %v247_v9 = vld [vmem:[%s1848_s2] sm:$0xff]  ;;  %v248_v10 = vld [vmem:[%s1848_s2 + $0x8] sm:$0xff]  ;;  %v250_v15 = vld [vmem:[%s1848_s2 + $0x18] sm:$0xff] }
   0x5   :  { %1056 = vmatpush3.bf16.msra.mxu0 %v1053_v3  ;;  %1074 = vmatpush3.bf16.msra.mxu1 %v1053_v3  ;;  %v445_v11 = vld [vmem:[%s1848_s2 + $0x20] sm:$0xff]  ;;  %v1057_v12 = vpack.c.bf16 %v248_v10, %v247_v9  ;;  %v446_v13 = vld [vmem:[%s1848_s2 + $0x28] sm:$0xff]  ;;  %v22_v16 = vld [vmem:[%s1847_s0 + $0x18] sm:$0xff]  ;;  %v1061_v21 = vpack.c.bf16 %v250_v15, %v249_v14 }
   0x6   :  { %977 = vmatprep.mubr.msk.f32.mxu1 %vm37_vm0, %v27_v4  ;;  %v30_v17 = vld [vmem:[%s1847_s0 + $0x58] sm:$0xff]  ;;  %v1065_v18 = vpack.c.bf16 %v446_v13, %v445_v11  ;;  %v23_v19 = vld [vmem:[%s1847_s0 + $0x20] sm:$0xff]  ;;  %v24_v22 = vld [vmem:[%s1847_s0 + $0x28] sm:$0xff] }
   0x7   :  { %v31_v20 = vld [vmem:[%s1847_s0 + $0x60] sm:$0xff]  ;;  %1058 = vmatprep.subr.bf16.mxu1 %v1057_v12  ;;  %v32_v23 = vld [vmem:[%s1847_s0 + $0x68] sm:$0xff]  ;;  %v25_v24 = vld [vmem:[%s1847_s0 + $0x30] sm:$0xff] }
   0x8   :  { %966 = vmatmul.mubr.msk.f32.vlgmr.msra.gmra.mrb[0].mxu0 %vm37_vm0, %v20_v5  ;;  %978 = vmatmul.mubr.msk.f32.vlgmr.msra.gmra.mrb[0].mxu1 %vm37_vm0, %v28_v6  ;;  %v33_v25 = vld [vmem:[%s1847_s0 + $0x70] sm:$0xff]  ;;  %v26_v26 = vld [vmem:[%s1847_s0 + $0x38] sm:$0xff]  ;;  %v1366_v63 = vld [vmem:[%s1850_s3] ss:$0 sm:$0xff] }
   0x9   :  { %968 = vmatprep.mubr.msk.f32.mxu0 %vm37_vm0, %v21_v7  ;;  %980 = vmatprep.mubr.msk.f32.mxu1 %vm37_vm0, %v29_v8  ;;  %v34_v27 = vld [vmem:[%s1847_s0 + $0x78] sm:$0xff]  ;;  %v447_v28 = vld [vmem:[%s1848_s2 + $0x30] sm:$0xff] }
   0xa   :  { %1060 = vmatpush3.bf16.msra.mxu1 %v1057_v12  ;;  %1066 = vmatprep.subr.bf16.mxu0 %v1065_v18  ;;  %v448_v29 = vld [vmem:[%s1848_s2 + $0x38] sm:$0xff] }
   0xb   :  { %1062 = vmatprep.subr.bf16.mxu1 %v1061_v21  ;;  %1068 = vmatpush3.bf16.msra.mxu0 %v1065_v18  ;;  %v1069_v30 = vpack.c.bf16 %v448_v29, %v447_v28 }
   0xc   :  { %969 = vmatmul.mubr.msk.f32.gmra.mrb[2].mxu0 %vm37_vm0, %v22_v16  ;;  %981 = vmatmul.mubr.msk.f32.gmra.mrb[2].mxu1 %vm37_vm0, %v30_v17 }
   0xd   :  { %971 = vmatprep.mubr.msk.f32.mxu0 %vm37_vm0, %v23_v19  ;;  %983 = vmatprep.mubr.msk.f32.mxu1 %vm37_vm0, %v31_v20 }
   0xe   :  { %1064 = vmatpush3.bf16.msra.mxu1 %v1061_v21  ;;  %1070 = vmatprep.subr.bf16.mxu0 %v1069_v30 }
   0xf   :  { %1072 = vmatpush3.bf16.msra.mxu0 %v1069_v30 }
  0x10   :  { %972 = vmatmul.mubr.msk.f32.gmra.mrb[4].mxu0 %vm37_vm0, %v24_v22  ;;  %984 = vmatmul.mubr.msk.f32.gmra.mrb[4].mxu1 %vm37_vm0, %v32_v23 }
  0x11   :  { %974 = vmatprep.mubr.msk.f32.mxu0 %vm37_vm0, %v25_v24  ;;  %986 = vmatprep.mubr.msk.f32.mxu1 %vm37_vm0, %v33_v25 }
  0x14   :  { %975 = vmatmul.mubr.msk.f32.gmra.mrb[6].mxu0 %vm37_vm0, %v26_v26  ;;  %987 = vmatmul.mubr.msk.f32.gmra.mrb[6].mxu1 %vm37_vm0, %v34_v27 }
  0xdb   :  { %v1203_v31 = vpop.f32.mrb[0].mxu0  ;;  %v1205_v32 = vpop.f32.mrb[0].mxu1 }
  0xdc   :  { %799 = vst.msk [vmem:[%s1849_s5 + $0x8] sm:$0xff] %vm251_vm1, %v1203_v31  ;;  %v1212_v33 = vpop.f32.mrb[1].mxu0  ;;  %807 = vst.msk [vmem:[%s1849_s5 + $0x48] sm:$0xff] %vm251_vm1, %v1205_v32  ;;  %v1219_v34 = vpop.f32.mrb[1].mxu1  ;;  %v232_v36 = vmax.f32 %v1203_v31, 0.0  ;;  %v240_v56 = vmax.f32 %v1205_v32, 0.0 }
  0xdd   :  { %v231_v35 = vmax.f32 %v1212_v33, 0.0  ;;  %798 = vst.msk [vmem:[%s1849_s5] sm:$0xff] %vm251_vm1, %v1212_v33  ;;  %806 = vst.msk [vmem:[%s1849_s5 + $0x40] sm:$0xff] %vm251_vm1, %v1219_v34  ;;  %v239_v55 = vmax.f32 %v1219_v34, 0.0 }
  0xdf   :  { %v1233_v37 = vpop.f32.mrb[2].mxu0  ;;  %997 = vmatprep.mubr.msk.f32.mxu1 %vm251_vm1, %v231_v35  ;;  %1029 = vmatprep.mubr.msk.f32.mxu0 %vm251_vm1, %v231_v35  ;;  %v1237_v38 = vpop.f32.mrb[2].mxu1 }
  0xe0   :  { %v234_v39 = vmax.f32 %v1233_v37, 0.0  ;;  %801 = vst.msk [vmem:[%s1849_s5 + $0x18] sm:$0xff] %vm251_vm1, %v1233_v37  ;;  %v1245_v40 = vpop.f32.mrb[3].mxu0  ;;  %998 = vmatmul.mubr.msk.f32.vlgmr.msra.gmra.mrb[8].mxu1 %vm251_vm1, %v232_v36  ;;  %1030 = vmatmul.mubr.msk.f32.vlgmr.msra.gmra.mrb[8].mxu0 %vm251_vm1, %v232_v36  ;;  %809 = vst.msk [vmem:[%s1849_s5 + $0x58] sm:$0xff] %vm251_vm1, %v1237_v38  ;;  %v1254_v41 = vpop.f32.mrb[3].mxu1  ;;  %v242_v58 = vmax.f32 %v1237_v38, 0.0 }
  0xe1   :  { %v233_v42 = vmax.f32 %v1245_v40, 0.0  ;;  %800 = vst.msk [vmem:[%s1849_s5 + $0x10] sm:$0xff] %vm251_vm1, %v1245_v40  ;;  %808 = vst.msk [vmem:[%s1849_s5 + $0x50] sm:$0xff] %vm251_vm1, %v1254_v41  ;;  %v241_v57 = vmax.f32 %v1254_v41, 0.0 }
  0xe3   :  { %1000 = vmatprep.mubr.msk.f32.mxu1 %vm251_vm1, %v233_v42  ;;  %v1268_v43 = vpop.f32.mrb[4].mxu0  ;;  %1032 = vmatprep.mubr.msk.f32.mxu0 %vm251_vm1, %v233_v42  ;;  %v1271_v44 = vpop.f32.mrb[4].mxu1 }
  0xe4   :  { %1001 = vmatmul.mubr.msk.f32.gmra.mrb[10].mxu1 %vm251_vm1, %v234_v39  ;;  %v236_v45 = vmax.f32 %v1268_v43, 0.0  ;;  %803 = vst.msk [vmem:[%s1849_s5 + $0x28] sm:$0xff] %vm251_vm1, %v1268_v43  ;;  %v1280_v46 = vpop.f32.mrb[5].mxu0  ;;  %1033 = vmatmul.mubr.msk.f32.gmra.mrb[10].mxu0 %vm251_vm1, %v234_v39  ;;  %811 = vst.msk [vmem:[%s1849_s5 + $0x68] sm:$0xff] %vm251_vm1, %v1271_v44  ;;  %v1288_v47 = vpop.f32.mrb[5].mxu1  ;;  %v244_v60 = vmax.f32 %v1271_v44, 0.0 }
  0xe5   :  { %v235_v48 = vmax.f32 %v1280_v46, 0.0  ;;  %802 = vst.msk [vmem:[%s1849_s5 + $0x20] sm:$0xff] %vm251_vm1, %v1280_v46  ;;  %810 = vst.msk [vmem:[%s1849_s5 + $0x60] sm:$0xff] %vm251_vm1, %v1288_v47  ;;  %v243_v59 = vmax.f32 %v1288_v47, 0.0 }
  0xe7   :  { %1003 = vmatprep.mubr.msk.f32.mxu1 %vm251_vm1, %v235_v48  ;;  %1035 = vmatprep.mubr.msk.f32.mxu0 %vm251_vm1, %v235_v48  ;;  %v1303_v49 = vpop.f32.mrb[6].mxu0  ;;  %v1305_v50 = vpop.f32.mrb[6].mxu1 }
  0xe8   :  { %1004 = vmatmul.mubr.msk.f32.gmra.mrb[12].mxu1 %vm251_vm1, %v236_v45  ;;  %1036 = vmatmul.mubr.msk.f32.gmra.mrb[12].mxu0 %vm251_vm1, %v236_v45  ;;  %v238_v51 = vmax.f32 %v1303_v49, 0.0  ;;  %805 = vst.msk [vmem:[%s1849_s5 + $0x38] sm:$0xff] %vm251_vm1, %v1303_v49  ;;  %v1315_v52 = vpop.f32.mrb[7].mxu0  ;;  %813 = vst.msk [vmem:[%s1849_s5 + $0x78] sm:$0xff] %vm251_vm1, %v1305_v50  ;;  %v1322_v53 = vpop.f32.mrb[7].mxu1  ;;  %v246_v62 = vmax.f32 %v1305_v50, 0.0 }
  0xe9   :  { %v237_v54 = vmax.f32 %v1315_v52, 0.0  ;;  %804 = vst.msk [vmem:[%s1849_s5 + $0x30] sm:$0xff] %vm251_vm1, %v1315_v52  ;;  %812 = vst.msk [vmem:[%s1849_s5 + $0x70] sm:$0xff] %vm251_vm1, %v1322_v53  ;;  %v245_v61 = vmax.f32 %v1322_v53, 0.0 }
  0xeb   :  { %1006 = vmatprep.mubr.msk.f32.mxu1 %vm251_vm1, %v237_v54  ;;  %1038 = vmatprep.mubr.msk.f32.mxu0 %vm251_vm1, %v237_v54  ;;  %v1077_v54 = vmov 1.0  }
  0xec   :  { %1007 = vmatmul.mubr.msk.f32.gmra.mrb[14].mxu1 %vm251_vm1, %v238_v51  ;;  %1039 = vmatmul.mubr.msk.f32.gmra.mrb[14].mxu0 %vm251_vm1, %v238_v51  ;;  %815 = vst.msk [vmem:[%s1849_s5 + $0x8] sm:$0xff] %vm764_vm2, %v1077_v54  ;;  %814 = vst.msk [vmem:[%s1849_s5] sm:$0xff] %vm764_vm2, %v1077_v54 }
  0xed   :  { %1009 = vmatprep.mubr.msk.f32.mxu1 %vm251_vm1, %v239_v55  ;;  %1041 = vmatprep.mubr.msk.f32.mxu0 %vm251_vm1, %v239_v55  ;;  %816 = vst.msk [vmem:[%s1849_s5 + $0x10] sm:$0xff] %vm764_vm2, %v1077_v54  ;;  %817 = vst.msk [vmem:[%s1849_s5 + $0x18] sm:$0xff] %vm764_vm2, %v1077_v54 }
  0xee   :  { %818 = vst.msk [vmem:[%s1849_s5 + $0x20] sm:$0xff] %vm764_vm2, %v1077_v54  ;;  %819 = vst.msk [vmem:[%s1849_s5 + $0x28] sm:$0xff] %vm764_vm2, %v1077_v54 }
  0xef   :  { %820 = vst.msk [vmem:[%s1849_s5 + $0x30] sm:$0xff] %vm764_vm2, %v1077_v54  ;;  %821 = vst.msk [vmem:[%s1849_s5 + $0x38] sm:$0xff] %vm764_vm2, %v1077_v54 }
  0xf0   :  { %1010 = vmatmul.mubr.msk.f32.gmra.mrb[16].mxu1 %vm251_vm1, %v240_v56  ;;  %1042 = vmatmul.mubr.msk.f32.gmra.mrb[16].mxu0 %vm251_vm1, %v240_v56  ;;  %822 = vst.msk [vmem:[%s1849_s5 + $0x40] sm:$0xff] %vm764_vm2, %v1077_v54  ;;  %823 = vst.msk [vmem:[%s1849_s5 + $0x48] sm:$0xff] %vm764_vm2, %v1077_v54 }
  0xf1   :  { %1012 = vmatprep.mubr.msk.f32.mxu1 %vm251_vm1, %v241_v57  ;;  %1044 = vmatprep.mubr.msk.f32.mxu0 %vm251_vm1, %v241_v57  ;;  %824 = vst.msk [vmem:[%s1849_s5 + $0x50] sm:$0xff] %vm764_vm2, %v1077_v54  ;;  %825 = vst.msk [vmem:[%s1849_s5 + $0x58] sm:$0xff] %vm764_vm2, %v1077_v54 }
  0xf2   :  { %826 = vst.msk [vmem:[%s1849_s5 + $0x60] sm:$0xff] %vm764_vm2, %v1077_v54  ;;  %827 = vst.msk [vmem:[%s1849_s5 + $0x68] sm:$0xff] %vm764_vm2, %v1077_v54 }
  0xf3   :  { %828 = vst.msk [vmem:[%s1849_s5 + $0x70] sm:$0xff] %vm764_vm2, %v1077_v54  ;;  %829 = vst.msk [vmem:[%s1849_s5 + $0x78] sm:$0xff] %vm764_vm2, %v1077_v54 }
  0xf4   :  { %1013 = vmatmul.mubr.msk.f32.gmra.mrb[18].mxu1 %vm251_vm1, %v242_v58  ;;  %1045 = vmatmul.mubr.msk.f32.gmra.mrb[18].mxu0 %vm251_vm1, %v242_v58 }
  0xf5   :  { %1015 = vmatprep.mubr.msk.f32.mxu1 %vm251_vm1, %v243_v59  ;;  %1047 = vmatprep.mubr.msk.f32.mxu0 %vm251_vm1, %v243_v59 }
  0xf8   :  { %1016 = vmatmul.mubr.msk.f32.gmra.mrb[20].mxu1 %vm251_vm1, %v244_v60  ;;  %1048 = vmatmul.mubr.msk.f32.gmra.mrb[20].mxu0 %vm251_vm1, %v244_v60 }
  0xf9   :  { %1018 = vmatprep.mubr.msk.f32.mxu1 %vm251_vm1, %v245_v61  ;;  %1050 = vmatprep.mubr.msk.f32.mxu0 %vm251_vm1, %v245_v61 }
  0xfc   :  { %1019 = vmatmul.mubr.msk.f32.gmra.mrb[22].mxu1 %vm251_vm1, %v246_v62  ;;  %1051 = vmatmul.mubr.msk.f32.gmra.mrb[22].mxu0 %vm251_vm1, %v246_v62 }
 0x1b3   :  { %v999_v0 = vpop.f32.mrb[8].mxu1  ;;  %v1031_v1 = vpop.f32.mrb[8].mxu0 }
 0x1b4   :  { %v602_v2 = vmul.f32 %v999_v0, %v1366_v63  ;;  %v666_v3 = vmul.f32 %v1031_v1, %v1366_v63  ;;  %v366_v4 = vpop.f32.mrb[9].mxu1  ;;  %v515_v5 = vpop.f32.mrb[9].mxu0 }
 0x1b5   :  { %v601_v6 = vmul.f32 %v1366_v63, %v366_v4  ;;  %v665_v15 = vmul.f32 %v1366_v63, %v515_v5 }
 0x1b6   :  { %v620_v7 = vsel %vm251_vm1, %v602_v2, 0.0  ;;  %v684_v8 = vsel %vm251_vm1, %v666_v3, 0.0 }
 0x1b7   :  { %621 = vadd.xlane.f32.xlu0 %v620_v7  ;;  %v1002_v9 = vpop.f32.mrb[10].mxu1  ;;  %685 = vadd.xlane.f32.xlu1 %v684_v8  ;;  %v1034_v10 = vpop.f32.mrb[10].mxu0  ;;  %v617_v16 = vsel %vm251_vm1, %v601_v6, 0.0  ;;  %v681_v25 = vsel %vm251_vm1, %v665_v15, 0.0 }
 0x1b8   :  { %v604_v11 = vmul.f32 %v1002_v9, %v1366_v63  ;;  %v668_v12 = vmul.f32 %v1034_v10, %v1366_v63  ;;  %v376_v13 = vpop.f32.mrb[11].mxu1  ;;  %v525_v14 = vpop.f32.mrb[11].mxu0 }
 0x1b9   :  { %v603_v23 = vmul.f32 %v1366_v63, %v376_v13  ;;  %v667_v24 = vmul.f32 %v1366_v63, %v525_v14 }
 0x1ba   :  { %v626_v17 = vsel %vm251_vm1, %v604_v11, 0.0  ;;  %v690_v20 = vsel %vm251_vm1, %v668_v12, 0.0 }
 0x1bb   :  { %618 = vadd.xlane.f32.xlu0 %v617_v16  ;;  %627 = vadd.xlane.f32.xlu1 %v626_v17  ;;  %v1005_v18 = vpop.f32.mrb[12].mxu1  ;;  %v1037_v19 = vpop.f32.mrb[12].mxu0  ;;  %v623_v36 = vsel %vm251_vm1, %v603_v23, 0.0  ;;  %v687_v39 = vsel %vm251_vm1, %v667_v24, 0.0 }
 0x1bc   :  { %v386_v21 = vpop.f32.mrb[13].mxu1  ;;  %v535_v22 = vpop.f32.mrb[13].mxu0  ;;  %v606_v30 = vmul.f32 %v1005_v18, %v1366_v63  ;;  %v670_v55 = vmul.f32 %v1037_v19, %v1366_v63 }
 0x1bd   :  { %v605_v35 = vmul.f32 %v1366_v63, %v386_v21  ;;  %v669_v56 = vmul.f32 %v1366_v63, %v535_v22 }
 0x1be   :  { %v632_v57 = vsel %vm251_vm1, %v606_v30, 0.0  ;;  %v696_v2 = vsel %vm251_vm1, %v670_v55, 0.0 }
 0x1bf   :  { %682 = vadd.xlane.f32.xlu0 %v681_v25  ;;  %691 = vadd.xlane.f32.xlu1 %v690_v20  ;;  %v1008_v26 = vpop.f32.mrb[14].mxu1  ;;  %v1040_v27 = vpop.f32.mrb[14].mxu0  ;;  %v629_v58 = vsel %vm251_vm1, %v605_v35, 0.0  ;;  %v693_v3 = vsel %vm251_vm1, %v669_v56, 0.0 }
 0x1c0   :  { %v396_v28 = vpop.f32.mrb[15].mxu1  ;;  %v545_v29 = vpop.f32.mrb[15].mxu0  ;;  %v608_v0 = vmul.f32 %v1008_v26, %v1366_v63  ;;  %v672_v8 = vmul.f32 %v1040_v27, %v1366_v63 }
 0x1c1   :  { %v607_v1 = vmul.f32 %v1366_v63, %v396_v28  ;;  %v671_v9 = vmul.f32 %v1366_v63, %v545_v29 }
 0x1c2   :  { %v638_v10 = vsel %vm251_vm1, %v608_v0, 0.0  ;;  %v702_v18 = vsel %vm251_vm1, %v672_v8, 0.0 }
 0x1c3   :  { %624 = vadd.xlane.f32.xlu1 %v623_v36  ;;  %688 = vadd.xlane.f32.xlu0 %v687_v39  ;;  %v1043_v42 = vpop.f32.mrb[16].mxu0  ;;  %v1011_v45 = vpop.f32.mrb[16].mxu1  ;;  %v635_v11 = vsel %vm251_vm1, %v607_v1, 0.0  ;;  %v699_v19 = vsel %vm251_vm1, %v671_v9, 0.0 }
 0x1c4   :  { %v406_v48 = vpop.f32.mrb[17].mxu1  ;;  %v555_v51 = vpop.f32.mrb[17].mxu0  ;;  %v610_v16 = vmul.f32 %v1011_v45, %v1366_v63  ;;  %v674_v20 = vmul.f32 %v1043_v42, %v1366_v63 }
 0x1c5   :  { %v609_v17 = vmul.f32 %v1366_v63, %v406_v48  ;;  %v673_v21 = vmul.f32 %v1366_v63, %v555_v51 }
 0x1c6   :  { %v644_v22 = vsel %vm251_vm1, %v610_v16, 0.0  ;;  %v708_v26 = vsel %vm251_vm1, %v674_v20, 0.0 }
 0x1c7   :  { %633 = vadd.xlane.f32.xlu1 %v632_v57  ;;  %630 = vadd.xlane.f32.xlu0 %v629_v58  ;;  %v1046_v59 = vpop.f32.mrb[18].mxu0  ;;  %v1014_v60 = vpop.f32.mrb[18].mxu1  ;;  %v641_v23 = vsel %vm251_vm1, %v609_v17, 0.0  ;;  %v705_v27 = vsel %vm251_vm1, %v673_v21, 0.0 }
 0x1c8   :  { %v416_v61 = vpop.f32.mrb[19].mxu1  ;;  %v565_v62 = vpop.f32.mrb[19].mxu0  ;;  %v612_v24 = vmul.f32 %v1014_v60, %v1366_v63  ;;  %v676_v28 = vmul.f32 %v1046_v59, %v1366_v63 }
 0x1c9   :  { %v611_v25 = vmul.f32 %v1366_v63, %v416_v61  ;;  %v675_v29 = vmul.f32 %v1366_v63, %v565_v62 }
 0x1ca   :  { %v650_v30 = vsel %vm251_vm1, %v612_v24, 0.0  ;;  %v714_v42 = vsel %vm251_vm1, %v676_v28, 0.0 }
 0x1cb   :  { %697 = vadd.xlane.f32.xlu1 %v696_v2  ;;  %694 = vadd.xlane.f32.xlu0 %v693_v3  ;;  %v1049_v4 = vpop.f32.mrb[20].mxu0  ;;  %v1017_v5 = vpop.f32.mrb[20].mxu1  ;;  %v647_v35 = vsel %vm251_vm1, %v611_v25, 0.0  ;;  %v711_v45 = vsel %vm251_vm1, %v675_v29, 0.0 }
 0x1cc   :  { %v426_v6 = vpop.f32.mrb[21].mxu1  ;;  %v575_v7 = vpop.f32.mrb[21].mxu0  ;;  %v614_v36 = vmul.f32 %v1017_v5, %v1366_v63  ;;  %v678_v48 = vmul.f32 %v1049_v4, %v1366_v63 }
 0x1cd   :  { %v613_v39 = vmul.f32 %v1366_v63, %v426_v6  ;;  %v677_v51 = vmul.f32 %v1366_v63, %v575_v7 }
 0x1ce   :  { %v656_v55 = vsel %vm251_vm1, %v614_v36, 0.0  ;;  %v720_v59 = vsel %vm251_vm1, %v678_v48, 0.0 }
 0x1cf   :  { %639 = vadd.xlane.f32.xlu1 %v638_v10  ;;  %636 = vadd.xlane.f32.xlu0 %v635_v11  ;;  %v1052_v12 = vpop.f32.mrb[22].mxu0  ;;  %v1020_v13 = vpop.f32.mrb[22].mxu1  ;;  %v653_v56 = vsel %vm251_vm1, %v613_v39, 0.0  ;;  %v717_v60 = vsel %vm251_vm1, %v677_v51, 0.0 }
 0x1d0   :  { %v436_v14 = vpop.f32.mrb[23].mxu1  ;;  %v585_v15 = vpop.f32.mrb[23].mxu0  ;;  %v616_v57 = vmul.f32 %v1020_v13, %v1366_v63  ;;  %v680_v61 = vmul.f32 %v1052_v12, %v1366_v63 }
 0x1d1   :  { %v615_v58 = vmul.f32 %v1366_v63, %v436_v14  ;;  %v679_v62 = vmul.f32 %v1366_v63, %v585_v15 }
 0x1d2   :  { %v662_v0 = vsel %vm251_vm1, %v616_v57, 0.0  ;;  %v726_v2 = vsel %vm251_vm1, %v680_v61, 0.0 }
 0x1d3   :  { %703 = vadd.xlane.f32.xlu1 %v702_v18  ;;  %700 = vadd.xlane.f32.xlu0 %v699_v19  ;;  %v659_v1 = vsel %vm251_vm1, %v615_v58, 0.0  ;;  %v723_v3 = vsel %vm251_vm1, %v679_v62, 0.0 }
 0x1d7   :  { %645 = vadd.xlane.f32.xlu1 %v644_v22  ;;  %642 = vadd.xlane.f32.xlu0 %v641_v23 }
 0x1db   :  { %709 = vadd.xlane.f32.xlu1 %v708_v26  ;;  %706 = vadd.xlane.f32.xlu0 %v705_v27 }
 0x1df   :  { %651 = vadd.xlane.f32.xlu1 %v650_v30  ;;  %648 = vadd.xlane.f32.xlu0 %v647_v35 }
 0x1e3   :  { %715 = vadd.xlane.f32.xlu1 %v714_v42  ;;  %712 = vadd.xlane.f32.xlu0 %v711_v45 }
 0x1e7   :  { %657 = vadd.xlane.f32.xlu1 %v656_v55  ;;  %654 = vadd.xlane.f32.xlu0 %v653_v56 }
 0x1eb   :  { %721 = vadd.xlane.f32.xlu1 %v720_v59  ;;  %718 = vadd.xlane.f32.xlu0 %v717_v60 }
 0x1ef   :  { %663 = vadd.xlane.f32.xlu1 %v662_v0  ;;  %660 = vadd.xlane.f32.xlu0 %v659_v1 }
 0x1f3   :  { %727 = vadd.xlane.f32.xlu1 %v726_v2  ;;  %724 = vadd.xlane.f32.xlu0 %v723_v3 }
 0x209   :  { %729 = vrot.lane.b32.xlu0 %v1366_v63, %s1078_s24 }
 0x244   :  { %v1513_v4 = vpop.xlane.xlu0 %621  ;;  %v686_v5 = vpop.xlane.xlu1 %685 }
 0x245   :  { %831 = vst.msk [vmem:[%s1849_s5 + $0x8] sm:$0xff] %vm781_vm3, %v686_v5 }
 0x248   :  { %v1519_v6 = vpop.xlane.xlu0 %618  ;;  %v1521_v7 = vpop.xlane.xlu1 %627 }
 0x24c   :  { %v683_v8 = vpop.xlane.xlu0 %682  ;;  %v692_v9 = vpop.xlane.xlu1 %691 }
 0x24d   :  { %830 = vst.msk [vmem:[%s1849_s5] sm:$0xff] %vm781_vm3, %v683_v8  ;;  %833 = vst.msk [vmem:[%s1849_s5 + $0x18] sm:$0xff] %vm781_vm3, %v692_v9 }
 0x250   :  { %v1531_v63 = vpop.xlane.xlu1 %624  ;;  %v689_v10 = vpop.xlane.xlu0 %688 }
 0x251   :  { %832 = vst.msk [vmem:[%s1849_s5 + $0x10] sm:$0xff] %vm781_vm3, %v689_v10 }
 0x254   :  { %v1537_v11 = vpop.xlane.xlu1 %633  ;;  %v1539_v12 = vpop.xlane.xlu0 %630 }
 0x258   :  { %v698_v13 = vpop.xlane.xlu1 %697  ;;  %v695_v14 = vpop.xlane.xlu0 %694 }
 0x259   :  { %835 = vst.msk [vmem:[%s1849_s5 + $0x28] sm:$0xff] %vm781_vm3, %v698_v13  ;;  %834 = vst.msk [vmem:[%s1849_s5 + $0x20] sm:$0xff] %vm781_vm3, %v695_v14 }
 0x25c   :  { %v1549_v15 = vpop.xlane.xlu1 %639  ;;  %v1551_v16 = vpop.xlane.xlu0 %636 }
 0x260   :  { %v704_v17 = vpop.xlane.xlu1 %703  ;;  %v701_v18 = vpop.xlane.xlu0 %700 }
 0x261   :  { %837 = vst.msk [vmem:[%s1849_s5 + $0x38] sm:$0xff] %vm781_vm3, %v704_v17  ;;  %836 = vst.msk [vmem:[%s1849_s5 + $0x30] sm:$0xff] %vm781_vm3, %v701_v18 }
 0x264   :  { %v1561_v19 = vpop.xlane.xlu1 %645  ;;  %v1563_v20 = vpop.xlane.xlu0 %642 }
 0x268   :  { %v710_v21 = vpop.xlane.xlu1 %709  ;;  %v707_v22 = vpop.xlane.xlu0 %706 }
 0x269   :  { %839 = vst.msk [vmem:[%s1849_s5 + $0x48] sm:$0xff] %vm781_vm3, %v710_v21  ;;  %838 = vst.msk [vmem:[%s1849_s5 + $0x40] sm:$0xff] %vm781_vm3, %v707_v22 }
 0x26c   :  { %v1573_v23 = vpop.xlane.xlu1 %651  ;;  %v1575_v24 = vpop.xlane.xlu0 %648 }
 0x270   :  { %v716_v25 = vpop.xlane.xlu1 %715  ;;  %v713_v26 = vpop.xlane.xlu0 %712 }
 0x271   :  { %841 = vst.msk [vmem:[%s1849_s5 + $0x58] sm:$0xff] %vm781_vm3, %v716_v25  ;;  %840 = vst.msk [vmem:[%s1849_s5 + $0x50] sm:$0xff] %vm781_vm3, %v713_v26 }
 0x274   :  { %v1585_v27 = vpop.xlane.xlu1 %657  ;;  %v1587_v28 = vpop.xlane.xlu0 %654 }
 0x278   :  { %v722_v29 = vpop.xlane.xlu1 %721  ;;  %v719_v30 = vpop.xlane.xlu0 %718 }
 0x279   :  { %843 = vst.msk [vmem:[%s1849_s5 + $0x68] sm:$0xff] %vm781_vm3, %v722_v29  ;;  %842 = vst.msk [vmem:[%s1849_s5 + $0x60] sm:$0xff] %vm781_vm3, %v719_v30 }
 0x27c   :  { %v1597_v35 = vpop.xlane.xlu1 %663  ;;  %v661_v36 = vpop.xlane.xlu0 %660 }
 0x280   :  { %v728_v39 = vpop.xlane.xlu1 %727  ;;  %v725_v42 = vpop.xlane.xlu0 %724 }
 0x281   :  { %845 = vst.msk [vmem:[%s1849_s5 + $0x78] sm:$0xff] %vm781_vm3, %v728_v39  ;;  %844 = vst.msk [vmem:[%s1849_s5 + $0x70] sm:$0xff] %vm781_vm3, %v725_v42 }
 0x284   :  { %v730_v45 = vpop.permute.xlu0 %729 }
 0x285   :  { %v732_v48 = vmul.f32 %v730_v45, %v1212_v33  ;;  %v733_v51 = vmul.f32 %v1203_v31, %v730_v45  ;;  %v734_v55 = vmul.f32 %v730_v45, %v1245_v40  ;;  %v735_v56 = vmul.f32 %v1233_v37, %v730_v45 }
 0x286   :  { %v736_v57 = vmul.f32 %v730_v45, %v1280_v46  ;;  %v737_v58 = vmul.f32 %v1268_v43, %v730_v45  ;;  %v738_v59 = vmul.f32 %v730_v45, %v1315_v52  ;;  %v739_v60 = vmul.f32 %v1303_v49, %v730_v45 }
 0x287   :  { %v740_v61 = vmul.f32 %v730_v45, %v1219_v34  ;;  %v741_v62 = vmul.f32 %v1205_v32, %v730_v45  ;;  %v742_v33 = vmul.f32 %v730_v45, %v1254_v41  ;;  %v743_v31 = vmul.f32 %v1237_v38, %v730_v45  ;;  %748 = vst.msk [vmem:[%s1851_s4] sm:$0xff] %vm251_vm1, %v732_v48 }
 0x288   :  { %749 = vst.msk [vmem:[%s1851_s4 + $0x8] sm:$0xff] %vm251_vm1, %v733_v51  ;;  %750 = vst.msk [vmem:[%s1851_s4 + $0x10] sm:$0xff] %vm251_vm1, %v734_v55  ;;  %v744_v32 = vmul.f32 %v730_v45, %v1288_v47  ;;  %v745_v34 = vmul.f32 %v1271_v44, %v730_v45  ;;  %v746_v37 = vmul.f32 %v730_v45, %v1322_v53 }
 0x289   :  { %751 = vst.msk [vmem:[%s1851_s4 + $0x18] sm:$0xff] %vm251_vm1, %v735_v56  ;;  %v747_v38 = vmul.f32 %v1305_v50, %v730_v45  ;;  %752 = vst.msk [vmem:[%s1851_s4 + $0x20] sm:$0xff] %vm251_vm1, %v736_v57 }
 0x28a   :  { %753 = vst.msk [vmem:[%s1851_s4 + $0x28] sm:$0xff] %vm251_vm1, %v737_v58  ;;  %754 = vst.msk [vmem:[%s1851_s4 + $0x30] sm:$0xff] %vm251_vm1, %v738_v59 }
 0x28b   :  { %755 = vst.msk [vmem:[%s1851_s4 + $0x38] sm:$0xff] %vm251_vm1, %v739_v60  ;;  %756 = vst.msk [vmem:[%s1851_s4 + $0x40] sm:$0xff] %vm251_vm1, %v740_v61 }
 0x28c   :  { %765 = vst.msk [vmem:[%s1851_s4] sm:$0xff] %vm764_vm2, %v1519_v6  ;;  %766 = vst.msk [vmem:[%s1851_s4 + $0x8] sm:$0xff] %vm764_vm2, %v1513_v4 }
 0x28d   :  { %767 = vst.msk [vmem:[%s1851_s4 + $0x10] sm:$0xff] %vm764_vm2, %v1531_v63  ;;  %768 = vst.msk [vmem:[%s1851_s4 + $0x18] sm:$0xff] %vm764_vm2, %v1521_v7 }
 0x28e   :  { %757 = vst.msk [vmem:[%s1851_s4 + $0x48] sm:$0xff] %vm251_vm1, %v741_v62  ;;  %758 = vst.msk [vmem:[%s1851_s4 + $0x50] sm:$0xff] %vm251_vm1, %v742_v33 }
 0x28f   :  { %759 = vst.msk [vmem:[%s1851_s4 + $0x58] sm:$0xff] %vm251_vm1, %v743_v31  ;;  %760 = vst.msk [vmem:[%s1851_s4 + $0x60] sm:$0xff] %vm251_vm1, %v744_v32 }
 0x290   :  { %769 = vst.msk [vmem:[%s1851_s4 + $0x20] sm:$0xff] %vm764_vm2, %v1539_v12  ;;  %770 = vst.msk [vmem:[%s1851_s4 + $0x28] sm:$0xff] %vm764_vm2, %v1537_v11 }
 0x291   :  { %771 = vst.msk [vmem:[%s1851_s4 + $0x30] sm:$0xff] %vm764_vm2, %v1551_v16  ;;  %772 = vst.msk [vmem:[%s1851_s4 + $0x38] sm:$0xff] %vm764_vm2, %v1549_v15 }
 0x292   :  { %782 = vst.msk [vmem:[%s1851_s4] sm:$0xff] %vm781_vm3, %v1077_v54  ;;  %783 = vst.msk [vmem:[%s1851_s4 + $0x8] sm:$0xff] %vm781_vm3, %v1077_v54 }
 0x293   :  { %784 = vst.msk [vmem:[%s1851_s4 + $0x10] sm:$0xff] %vm781_vm3, %v1077_v54  ;;  %785 = vst.msk [vmem:[%s1851_s4 + $0x18] sm:$0xff] %vm781_vm3, %v1077_v54 }
 0x294   :  { %761 = vst.msk [vmem:[%s1851_s4 + $0x68] sm:$0xff] %vm251_vm1, %v745_v34  ;;  %762 = vst.msk [vmem:[%s1851_s4 + $0x70] sm:$0xff] %vm251_vm1, %v746_v37 }
 0x295   :  { %763 = vst.msk [vmem:[%s1851_s4 + $0x78] sm:$0xff] %vm251_vm1, %v747_v38 }
 0x296   :  { %773 = vst.msk [vmem:[%s1851_s4 + $0x40] sm:$0xff] %vm764_vm2, %v1563_v20  ;;  %774 = vst.msk [vmem:[%s1851_s4 + $0x48] sm:$0xff] %vm764_vm2, %v1561_v19 }
 0x297   :  { %775 = vst.msk [vmem:[%s1851_s4 + $0x50] sm:$0xff] %vm764_vm2, %v1575_v24  ;;  %776 = vst.msk [vmem:[%s1851_s4 + $0x58] sm:$0xff] %vm764_vm2, %v1573_v23 }
 0x298   :  { %786 = vst.msk [vmem:[%s1851_s4 + $0x20] sm:$0xff] %vm781_vm3, %v1077_v54  ;;  %787 = vst.msk [vmem:[%s1851_s4 + $0x28] sm:$0xff] %vm781_vm3, %v1077_v54 }
 0x299   :  { %788 = vst.msk [vmem:[%s1851_s4 + $0x30] sm:$0xff] %vm781_vm3, %v1077_v54  ;;  %789 = vst.msk [vmem:[%s1851_s4 + $0x38] sm:$0xff] %vm781_vm3, %v1077_v54 }
 0x29a   :  { %777 = vst.msk [vmem:[%s1851_s4 + $0x60] sm:$0xff] %vm764_vm2, %v1587_v28  ;;  %778 = vst.msk [vmem:[%s1851_s4 + $0x68] sm:$0xff] %vm764_vm2, %v1585_v27 }
 0x29b   :  { %779 = vst.msk [vmem:[%s1851_s4 + $0x70] sm:$0xff] %vm764_vm2, %v661_v36  ;;  %780 = vst.msk [vmem:[%s1851_s4 + $0x78] sm:$0xff] %vm764_vm2, %v1597_v35 }
 0x29c   :  { %790 = vst.msk [vmem:[%s1851_s4 + $0x40] sm:$0xff] %vm781_vm3, %v1077_v54  ;;  %791 = vst.msk [vmem:[%s1851_s4 + $0x48] sm:$0xff] %vm781_vm3, %v1077_v54 }
 0x29d   :  { %792 = vst.msk [vmem:[%s1851_s4 + $0x50] sm:$0xff] %vm781_vm3, %v1077_v54  ;;  %793 = vst.msk [vmem:[%s1851_s4 + $0x58] sm:$0xff] %vm781_vm3, %v1077_v54 }
 0x29e   :  { %794 = vst.msk [vmem:[%s1851_s4 + $0x60] sm:$0xff] %vm781_vm3, %v1077_v54  ;;  %795 = vst.msk [vmem:[%s1851_s4 + $0x68] sm:$0xff] %vm781_vm3, %v1077_v54 }
 0x29f   :  { %796 = vst.msk [vmem:[%s1851_s4 + $0x70] sm:$0xff] %vm781_vm3, %v1077_v54  ;;  %797 = vst.msk [vmem:[%s1851_s4 + $0x78] sm:$0xff] %vm781_vm3, %v1077_v54 }

</bundles_post_ra>
